<compile_context>
chip_gen: v6e
topology: v6e:2x2x1
jax: 0.10.0
libtpu: 0.0.40
codegen_flags: <defaults>
</compile_context>

<pallas_src>
import math
import jax
import jax.numpy as jnp
from jax.experimental import pallas as pl
from jax.experimental.pallas import tpu as pltpu


# ----------------------------- init-time buffer ------------------------------

def make_pe_buffer(num_hiddens, max_len=5000, dtype=jnp.float32):
    """Equivalent of register_buffer('pe', ...) built in __init__ (not forward).

    Pass dtype=jnp.bfloat16 if the surrounding model runs bf16 (halves the
    HBM bytes moved per call); f32 default matches the PyTorch reference.
    """
    assert num_hiddens % 2 == 0, "num_hiddens must be even (same as the PyTorch ref)"
    position = jnp.arange(max_len, dtype=jnp.float32)[:, None]             # (L, 1)
    div_term = jnp.exp(jnp.arange(0, num_hiddens, 2, dtype=jnp.float32)
                       * -(math.log(10000.0) / num_hiddens))               # (D/2,)
    angles = position * div_term                                           # (L, D/2)
    pe = jnp.zeros((max_len, num_hiddens), jnp.float32)
    pe = pe.at[:, 0::2].set(jnp.sin(angles))
    pe = pe.at[:, 1::2].set(jnp.cos(angles))
    return pe.astype(dtype)                                                # (L, D)


# ----------------------------- kernel ----------------------------------------

def pe_forward_kernel(pe_hbm, o_hbm, sem):
    # forward: dropout(pe[:, :S]); dropout is identity in eval mode, so the
    # forward is one contiguous row-window copy of the constant buffer,
    # issued as a single DMA descriptor HBM -> HBM (no VMEM round trip).
    # TODO(synk): training-mode dropout (pltpu.prng_seed + prng_random_bits
    #             keep-mask + 1/(1-p) rescale) not implemented; eval-mode only.
    S = o_hbm.shape[1]
    cp = pltpu.make_async_copy(pe_hbm.at[pl.ds(0, S), :],   # first S rows of the table
                               o_hbm.at[0],                 # (S, D) view of the output
                               sem)
    cp.start()
    cp.wait()


# ----------------------------- wrapper ----------------------------------------

def positional_encoding_forward(x, pe):
    """Pallas forward of PositionalEncoding.

    x:  (B, S, D) -- only S = x.shape[1] is used, exactly like the PyTorch module.
    pe: (max_len, D) constant buffer from make_pe_buffer.
    Returns (1, S, D), matching `self.dropout(self.pe[:, :x.size(1)])`.
    """
    S = x.shape[1]
    max_len, D = pe.shape
    assert S <= max_len, "seq_len exceeds max_len of the PE buffer"

    return pl.pallas_call(
        pe_forward_kernel,
        out_shape=jax.ShapeDtypeStruct((1, S, D), pe.dtype),
        in_specs=[pl.BlockSpec(memory_space=pl.ANY)],    # raw HBM ref; only S rows DMA'd
        out_specs=pl.BlockSpec(memory_space=pl.ANY),     # DMA writes the output directly
        scratch_shapes=[pltpu.SemaphoreType.DMA(())],
    )(pe)


# ----------------------------- setup / demo ----------------------------------

if __name__ == "__main__":
    # PositionalEncoding(num_hiddens=32, dropout=0.0, max_len=5000) in eval mode.
    B, S, D = 2, 8, 32
    max_len = 5000

    key = jax.random.PRNGKey(0)
    x = jax.random.normal(key, (B, S, D), jnp.float32)   # only its seq length matters

    pe = make_pe_buffer(D, max_len=max_len)              # __init__-time constant buffer
    out = positional_encoding_forward(x, pe)
    out = jax.block_until_ready(out)

    assert out.shape == (1, S, D) and out.dtype == jnp.float32
    # Forward is dropout(pe[:, :S]) with identity dropout -> must equal the slice.
    assert bool(jnp.allclose(out[0], pe[:S]))
    print("KERNEL_OK")
</pallas_src>

<mosaic_0001>
module attributes {stable_mosaic.version = 11 : i64} {
  func.func @pe_forward_kernel(%arg0: memref<5000x32xf32, #tpu.memory_space<any>>, %arg1: memref<1x8x32xf32, #tpu.memory_space<any>>, %arg2: memref<!tpu.dma_semaphore, #tpu.memory_space<semaphore_mem>>) attributes {dimension_semantics = [], scalar_prefetch = 0 : i64, scratch_operands = 1 : i64, tpu.core_type = #tpu.core_type<tc>} {
    %c0_i32 = arith.constant 0 : i32
    %c0_i32_0 = arith.constant 0 : i32
    %c0_i32_1 = arith.constant 0 : i32
    %0 = tpu.memref_slice %arg0[%c0_i32_0, %c0_i32_1] : memref<5000x32xf32, #tpu.memory_space<any>> -> memref<8x32xf32, #tpu.memory_space<any>>
    %c0_i32_2 = arith.constant 0 : i32
    %c0_i32_3 = arith.constant 0 : i32
    %1 = tpu.memref_slice %arg1[%c0_i32, %c0_i32_2, %c0_i32_3] : memref<1x8x32xf32, #tpu.memory_space<any>> -> memref<1x8x32xf32, #tpu.memory_space<any>>
    %2 = tpu.memref_squeeze %1 : memref<1x8x32xf32, #tpu.memory_space<any>> -> memref<8x32xf32, #tpu.memory_space<any>>
    tpu.enqueue_dma source(%0 : memref<8x32xf32, #tpu.memory_space<any>>) target(%2 : memref<8x32xf32, #tpu.memory_space<any>>) target_semaphore(%arg2 : memref<!tpu.dma_semaphore, #tpu.memory_space<semaphore_mem>>)
    %c0_i32_4 = arith.constant 0 : i32
    %c0_i32_5 = arith.constant 0 : i32
    %c0_i32_6 = arith.constant 0 : i32
    %3 = tpu.memref_slice %arg0[%c0_i32_5, %c0_i32_6] : memref<5000x32xf32, #tpu.memory_space<any>> -> memref<8x32xf32, #tpu.memory_space<any>>
    %c0_i32_7 = arith.constant 0 : i32
    %c0_i32_8 = arith.constant 0 : i32
    %4 = tpu.memref_slice %arg1[%c0_i32_4, %c0_i32_7, %c0_i32_8] : memref<1x8x32xf32, #tpu.memory_space<any>> -> memref<1x8x32xf32, #tpu.memory_space<any>>
    %5 = tpu.memref_squeeze %4 : memref<1x8x32xf32, #tpu.memory_space<any>> -> memref<8x32xf32, #tpu.memory_space<any>>
    tpu.wait_dma2 semaphore(%arg2 : memref<!tpu.dma_semaphore, #tpu.memory_space<semaphore_mem>>) src(%3 : memref<8x32xf32, #tpu.memory_space<any>>) dst(%5 : memref<8x32xf32, #tpu.memory_space<any>>)
    return
  }
}

</mosaic_0001>

<bundles_post_ra>
// kernel: tpu_custom_call.1
= control target key start
LH: loop header
LB: loop body
LE: loop exit
PB: predicated region body
PF: predicated region fallthrough
CT: control target
= control target key end

     0   :  { %s65_s0 = inlined_call_operand.vmem [shape: f32[5000,32], index: 0, kind: input, shape index: {}]   ;;  %s66_s1 = inlined_call_operand.hbm [shape: f32[1,8,32], index: 1, kind: output, shape index: {}]  }
   0x1   :  { %s13_s8 = sshll.u32 %s65_s0, 4  ;;  %s14_s8 = int_to_ptr.vmem [resolvable:$true] %s13_s8 }
   0x2   :  { %s27_s9 = scalar_lea.vmem %s14_s8, 128  ;;  %s31_s10 = scalar_lea.vmem %s14_s8, 80000 }
   0x3   :  { %p28_p0 = scmp.ne.s32.totalorder %s14_s8, %s27_s9  ;;  %p32_p1 = scmp.lt.s32.totalorder %s14_s8, %s14_s8 }
   0x4   :  { %p33_p2 = scmp.lt.s32.totalorder %s31_s10, %s27_s9 }
   0x6   :  { %p34_p3 = por %p33_p2, %p32_p1 }
   0x8   :  { %p35_p4 = pnand %p34_p3, %p28_p0 }
   0xa   :  { %38 = shalt.err (!%p35_p4)  }
   0xb   :  { %16 = dma.vmem_to_hbm [thread:$0]  %s14_s8, 128, %s66_s1, [#allocation2] }
   0xc   :  { %47 = dma.done.wait [#allocation2], 128 }
   0xd   :  { %48 = vsyncadd [#allocation2], 4294967168 }
   0xe   :  { %20 = vsyncmov [#allocation2] }
  0x11   :  { %s21_s13 = vpop.sfrf %20 }
  0x12   :  { %p26_p5 = scmp.ne.s32.totalorder %s21_s13, 0 }
  0x14   :  { %25 = shalt.err (%p26_p5)  }

</bundles_post_ra>
